<compile_context>
chip_gen: v5e
topology: v5e:2x2
jax: 0.10.0
libtpu: 0.0.40
codegen_flags: <defaults>
</compile_context>

<pallas_src>
import functools

import jax
import jax.numpy as jnp
from jax.experimental import pallas as pl
from jax.experimental.pallas import tpu as pltpu


def _round_up(x: int, m: int) -> int:
    return (x + m - 1) // m * m


@functools.lru_cache(maxsize=1)
def _vmem_limit_bytes() -> int:
    """Per-generation scoped-VMEM budget (v5e/v6e: 128 MiB phys, v7x: 64 MiB)."""
    try:
        info = pltpu.get_tpu_info()
        cap = int(getattr(info, "vmem_capacity_bytes", 64 * 1024 * 1024))
        return min(cap // 2, 64 * 1024 * 1024)
    except Exception:
        return 32 * 1024 * 1024


def _choose_tiles(n: int):
    """Pick (tm, tk, n_pad): large row tiles amortize per-step overhead and
    X-refetch, but never pad N by more than ~12.5% (or 128 rows for tiny
    graphs) since A_hat traffic scales with n_pad**2."""
    tm = 128
    for cand in (1024, 512, 256, 128):
        n_pad = _round_up(n, cand)
        if n_pad - n <= max(n // 8, 128):
            tm = cand
            break
    tk = min(512, tm)          # tk is a power of two <= tm, so tk | n_pad
    return tm, tk, _round_up(n, tm)


# ---------------------------------------------------------------------------
# Fused GraphConv layer kernel:  o = A_hat @ (X @ W) + b   (+ ReLU)
# grid = (row tiles, reduction tiles); W and b are resident (constant block).
# ---------------------------------------------------------------------------
def _gcn_layer_kernel(a_ref, x_ref, w_ref, b_ref, o_ref, acc_ref, *, apply_relu):
    k = pl.program_id(1)

    # Feature transform for this reduction tile (bf16 MXU, f32 accumulation).
    xw = jnp.dot(x_ref[...], w_ref[...],
                 preferred_element_type=jnp.float32).astype(jnp.bfloat16)
    partial = jnp.dot(a_ref[...], xw, preferred_element_type=jnp.float32)

    @pl.when(k == 0)
    def _():                       # direct write: no zero-init store
        acc_ref[...] = partial

    @pl.when(k != 0)
    def _():
        acc_ref[...] += partial

    @pl.when(k == pl.num_programs(1) - 1)
    def _():
        out = acc_ref[...] + b_ref[...]     # bias once per output tile
        if apply_relu:
            out = jnp.maximum(out, 0.0)
        o_ref[...] = out.astype(o_ref.dtype)


def gcn_layer(a_pad, x_pad, w_pad, b_pad, *, apply_relu, out_dtype, tm, tk):
    n_pad = a_pad.shape[0]
    f_in_pad, f_out_pad = w_pad.shape
    kernel = functools.partial(_gcn_layer_kernel, apply_relu=apply_relu)
    return pl.pallas_call(
        kernel,
        out_shape=jax.ShapeDtypeStruct((n_pad, f_out_pad), out_dtype),
        grid=(n_pad // tm, n_pad // tk),
        in_specs=[
            pl.BlockSpec((tm, tk), lambda i, k: (i, k)),            # A_hat tile
            pl.BlockSpec((tk, f_in_pad), lambda i, k: (k, 0)),      # X row tile
            pl.BlockSpec((f_in_pad, f_out_pad), lambda i, k: (0, 0)),  # W (resident)
            pl.BlockSpec((1, f_out_pad), lambda i, k: (0, 0)),      # bias
        ],
        out_specs=pl.BlockSpec((tm, f_out_pad), lambda i, k: (i, 0)),
        scratch_shapes=[pltpu.VMEM((tm, f_out_pad), jnp.float32)],
        compiler_params=pltpu.CompilerParams(
            dimension_semantics=("parallel", "arbitrary"),
            vmem_limit_bytes=_vmem_limit_bytes()),
    )(a_pad, x_pad, w_pad, b_pad)


# ---------------------------------------------------------------------------
# One-time setup: pad + cast A_hat, X, weights, biases (hoisted out of forward)
# ---------------------------------------------------------------------------
def prepare_gcn(a_hat, x, weights, biases):
    n = x.shape[0]
    tm, tk, n_pad = _choose_tiles(n)

    a_pad = jnp.zeros((n_pad, n_pad), jnp.bfloat16)
    a_pad = a_pad.at[:n, :n].set(a_hat.astype(jnp.bfloat16))

    f_in = x.shape[1]
    f_in_pad = _round_up(f_in, 128)
    x_pad = jnp.zeros((n_pad, f_in_pad), jnp.bfloat16)
    x_pad = x_pad.at[:n, :f_in].set(x.astype(jnp.bfloat16))

    w_pads, b_pads, f_outs = [], [], []
    cur_in_pad = f_in_pad
    for w, b in zip(weights, biases):
        f_out = w.shape[1]
        f_out_pad = _round_up(f_out, 128)
        w_pad = jnp.zeros((cur_in_pad, f_out_pad), jnp.bfloat16)
        w_pad = w_pad.at[:w.shape[0], :f_out].set(w.astype(jnp.bfloat16))
        b_pad = jnp.zeros((1, f_out_pad), jnp.float32)
        b_pad = b_pad.at[:, :f_out].set(
            jnp.reshape(b, (1, -1)).astype(jnp.float32))
        w_pads.append(w_pad)
        b_pads.append(b_pad)
        f_outs.append(f_out)
        cur_in_pad = f_out_pad

    return dict(a_pad=a_pad, x_pad=x_pad, w_pads=w_pads, b_pads=b_pads,
                f_outs=f_outs, n=n, tm=tm, tk=tk)


# ---------------------------------------------------------------------------
# _GCN.forward equivalent: returns [x, h1, ..., hL]
# ---------------------------------------------------------------------------
def gcn_forward(prep, x, act="relu", dropout=0.0, training=False):
    # TODO(synk): training-mode dropout omitted; eval-mode (identity) semantics.
    # TODO(synk): only 'relu' (and identity) activations implemented.
    a_pad = prep["a_pad"]
    h_pad = prep["x_pad"]
    n, tm, tk = prep["n"], prep["tm"], prep["tk"]
    n_layers = len(prep["w_pads"])

    results = [x]
    for layer in range(n_layers):
        is_last = layer == n_layers - 1
        apply_relu = (not is_last) and (act == "relu")
        out_dtype = jnp.float32 if is_last else jnp.bfloat16
        h_pad = gcn_layer(a_pad, h_pad, prep["w_pads"][layer],
                          prep["b_pads"][layer], apply_relu=apply_relu,
                          out_dtype=out_dtype, tm=tm, tk=tk)
        f_out = prep["f_outs"][layer]
        results.append(h_pad[:n, :f_out].astype(jnp.float32))
    return results


if __name__ == "__main__":
    key = jax.random.PRNGKey(0)
    N = 64                 # number of graph nodes
    input_dim = 32         # input feature dimension
    dimensions = (32, 16)  # GraphConv output dims per layer

    k_adj, k_feat, *k_ws = jax.random.split(key, 2 + len(dimensions))

    # Deterministic random symmetric graph (no self-loops); a ring guarantees
    # every node has >= 1 in/out edge (DGL GraphConv requires nonzero degree).
    probs = jax.random.uniform(k_adj, (N, N))
    adj = (probs < 0.08).astype(jnp.float32)
    ring = jnp.eye(N, k=1) + jnp.eye(N, k=-(N - 1))
    adj = jnp.clip(adj + adj.T + ring + ring.T, 0.0, 1.0)
    adj = adj * (1.0 - jnp.eye(N))

    # DGL GraphConv norm='both': D_dst^{-1/2} A D_src^{-1/2}, degrees >= 1.
    deg_out = jnp.clip(adj.sum(axis=0), 1.0, None)  # source out-degrees
    deg_in = jnp.clip(adj.sum(axis=1), 1.0, None)   # dest in-degrees
    a_hat = ((deg_in ** -0.5)[:, None] * adj *
             (deg_out ** -0.5)[None, :]).astype(jnp.float32)

    x = jax.random.normal(k_feat, (N, input_dim), dtype=jnp.float32)

    # Deterministic parameter init: Xavier-uniform weights, zero bias
    # (matches GraphConv.reset_parameters()).
    weights, biases = [], []
    f_in = input_dim
    for i, f_out in enumerate(dimensions):
        bound = (6.0 / (f_in + f_out)) ** 0.5
        w = jax.random.uniform(k_ws[i], (f_in, f_out),
                               minval=-bound, maxval=bound,
                               dtype=jnp.float32)
        weights.append(w)
        biases.append(jnp.zeros((1, f_out), jnp.float32))
        f_in = f_out

    prep = prepare_gcn(a_hat, x, weights, biases)          # one-time setup
    results = gcn_forward(prep, x, act="relu", dropout=0.5, training=False)
    jax.block_until_ready(results)

    # Reference that mimics the kernel's dtype flow (bf16 operands, f32
    # accumulation, bf16 intermediate storage) so the tolerance can be tight.
    a_q = a_hat.astype(jnp.bfloat16).astype(jnp.float32)
    h_q = x.astype(jnp.bfloat16).astype(jnp.float32)
    expected = [x]
    n_layers = len(weights)
    for layer in range(n_layers):
        w_q = weights[layer].astype(jnp.bfloat16).astype(jnp.float32)
        xw = (h_q @ w_q).astype(jnp.bfloat16).astype(jnp.float32)
        h = a_q @ xw + biases[layer]
        if layer < n_layers - 1:
            h = jnp.maximum(h, 0.0)
            h = h.astype(jnp.bfloat16).astype(jnp.float32)  # bf16 intermediate
        expected.append(h)
        h_q = h

    assert len(results) == len(dimensions) + 1
    assert results[-1].shape == (N, dimensions[-1])
    for got, exp in zip(results[1:], expected[1:]):
        assert got.shape == exp.shape
        err = float(jnp.max(jnp.abs(got - exp)))
        assert jnp.allclose(got, exp, rtol=2e-2, atol=2e-2), err

    print("KERNEL_OK")
</pallas_src>

<mosaic_0001>
module attributes {stable_mosaic.version = 11 : i64} {
  func.func @_gcn_layer_kernel(%arg0: i32, %arg1: i32, %arg2: memref<128x128xbf16, #tpu.memory_space<vmem>>, %arg3: memref<128x128xbf16, #tpu.memory_space<vmem>>, %arg4: memref<128x128xbf16, #tpu.memory_space<vmem>>, %arg5: memref<1x128xf32, #tpu.memory_space<vmem>>, %arg6: memref<128x128xbf16, #tpu.memory_space<vmem>>, %arg7: memref<128x128xf32, #tpu.memory_space<vmem>>) attributes {dimension_semantics = [#tpu.dimension_semantics<parallel>, #tpu.dimension_semantics<arbitrary>], iteration_bounds = array<i64: 1, 1>, scalar_prefetch = 0 : i64, scratch_operands = 1 : i64, tpu.core_type = #tpu.core_type<tc>, window_params = [{transform_indices = @transform_0, window_bounds = array<i64: 128, 128>}, {transform_indices = @transform_1, window_bounds = array<i64: 128, 128>}, {pipeline_mode = #tpu.pipeline_mode<synchronous>, transform_indices = @transform_2, window_bounds = array<i64: 128, 128>}, {pipeline_mode = #tpu.pipeline_mode<synchronous>, transform_indices = @transform_3, window_bounds = array<i64: 1, 128>}, {transform_indices = @transform_4, window_bounds = array<i64: 128, 128>}]} {
    %c0 = arith.constant 0 : index
    %c0_0 = arith.constant 0 : index
    %0 = vector.load %arg3[%c0, %c0_0] : memref<128x128xbf16, #tpu.memory_space<vmem>>, vector<128x128xbf16>
    %c0_1 = arith.constant 0 : index
    %c0_2 = arith.constant 0 : index
    %1 = vector.load %arg4[%c0_1, %c0_2] : memref<128x128xbf16, #tpu.memory_space<vmem>>, vector<128x128xbf16>
    %cst = arith.constant dense<0.000000e+00> : vector<128x128xf32>
    %2 = tpu.matmul %0, %1, %cst {dimension_numbers = #tpu.dot_dimension_numbers<[1], [0], [0], [1], [0, 0, 1, 1], [], []>} : vector<128x128xbf16>, vector<128x128xbf16>, vector<128x128xf32> -> vector<128x128xf32>
    %3 = arith.truncf %2 : vector<128x128xf32> to vector<128x128xbf16>
    %c0_3 = arith.constant 0 : index
    %c0_4 = arith.constant 0 : index
    %4 = vector.load %arg2[%c0_3, %c0_4] : memref<128x128xbf16, #tpu.memory_space<vmem>>, vector<128x128xbf16>
    %cst_5 = arith.constant dense<0.000000e+00> : vector<128x128xf32>
    %5 = tpu.matmul %4, %3, %cst_5 {dimension_numbers = #tpu.dot_dimension_numbers<[1], [0], [0], [1], [0, 0, 1, 1], [], []>} : vector<128x128xbf16>, vector<128x128xbf16>, vector<128x128xf32> -> vector<128x128xf32>
    %c0_i32 = arith.constant 0 : i32
    %6 = arith.cmpi eq, %arg1, %c0_i32 : i32
    %7 = arith.extui %6 : i1 to i32
    %c0_i32_6 = arith.constant 0 : i32
    %8 = arith.cmpi ne, %7, %c0_i32_6 : i32
    scf.if %8 {
      %c0_11 = arith.constant 0 : index
      %c0_12 = arith.constant 0 : index
      %15 = vector.load %arg7[%c0_11, %c0_12] : memref<128x128xf32, #tpu.memory_space<vmem>>, vector<128x128xf32>
      tpu.vector_store %arg7[%c0_11, %c0_12], %5 {strides = array<i32>} : memref<128x128xf32, #tpu.memory_space<vmem>>, vector<128x128xf32>,
    } else {
    }
    %c0_i32_7 = arith.constant 0 : i32
    %9 = arith.cmpi ne, %arg1, %c0_i32_7 : i32
    %10 = arith.extui %9 : i1 to i32
    %c0_i32_8 = arith.constant 0 : i32
    %11 = arith.cmpi ne, %10, %c0_i32_8 : i32
    scf.if %11 {
      %c0_11 = arith.constant 0 : index
      %c0_12 = arith.constant 0 : index
      %15 = vector.load %arg7[%c0_11, %c0_12] : memref<128x128xf32, #tpu.memory_space<vmem>>, vector<128x128xf32>
      %16 = arith.addf %15, %5 : vector<128x128xf32>
      %c0_13 = arith.constant 0 : index
      %c0_14 = arith.constant 0 : index
      %17 = vector.load %arg7[%c0_13, %c0_14] : memref<128x128xf32, #tpu.memory_space<vmem>>, vector<128x128xf32>
      tpu.vector_store %arg7[%c0_13, %c0_14], %16 {strides = array<i32>} : memref<128x128xf32, #tpu.memory_space<vmem>>, vector<128x128xf32>,
    } else {
    }
    %c0_i32_9 = arith.constant 0 : i32
    %12 = arith.cmpi eq, %arg1, %c0_i32_9 : i32
    %13 = arith.extui %12 : i1 to i32
    %c0_i32_10 = arith.constant 0 : i32
    %14 = arith.cmpi ne, %13, %c0_i32_10 : i32
    scf.if %14 {
      %c0_11 = arith.constant 0 : index
      %c0_12 = arith.constant 0 : index
      %15 = vector.load %arg7[%c0_11, %c0_12] : memref<128x128xf32, #tpu.memory_space<vmem>>, vector<128x128xf32>
      %c0_13 = arith.constant 0 : index
      %c0_14 = arith.constant 0 : index
      %16 = vector.load %arg5[%c0_13, %c0_14] : memref<1x128xf32, #tpu.memory_space<vmem>>, vector<1x128xf32>
      %17 = vector.broadcast %16 : vector<1x128xf32> to vector<128x128xf32>
      %18 = arith.addf %15, %17 : vector<128x128xf32>
      %cst_15 = arith.constant 0.000000e+00 : f32
      %19 = vector.broadcast %cst_15 : f32 to vector<128x128xf32>
      %20 = arith.maximumf %18, %19 : vector<128x128xf32>
      %21 = arith.truncf %20 : vector<128x128xf32> to vector<128x128xbf16>
      %c0_16 = arith.constant 0 : index
      %c0_17 = arith.constant 0 : index
      %22 = vector.load %arg6[%c0_16, %c0_17] : memref<128x128xbf16, #tpu.memory_space<vmem>>, vector<128x128xbf16>
      tpu.vector_store %arg6[%c0_16, %c0_17], %21 {strides = array<i32>} : memref<128x128xbf16, #tpu.memory_space<vmem>>, vector<128x128xbf16>,
    } else {
    }
    return
  }
  func.func @transform_0(%arg0: i32, %arg1: i32) -> (i32, i32) {
    %c0_i32 = arith.constant 0 : i32
    return %arg0, %arg1 : i32, i32
  }
  func.func @transform_1(%arg0: i32, %arg1: i32) -> (i32, i32) {
    %c0_i32 = arith.constant 0 : i32
    %c0_i32_0 = arith.constant 0 : i32
    return %arg1, %c0_i32 : i32, i32
  }
  func.func @transform_2(%arg0: i32, %arg1: i32) -> (i32, i32) {
    %c0_i32 = arith.constant 0 : i32
    %c0_i32_0 = arith.constant 0 : i32
    %c0_i32_1 = arith.constant 0 : i32
    return %c0_i32, %c0_i32_0 : i32, i32
  }
  func.func @transform_3(%arg0: i32, %arg1: i32) -> (i32, i32) {
    %c0_i32 = arith.constant 0 : i32
    %c0_i32_0 = arith.constant 0 : i32
    %c0_i32_1 = arith.constant 0 : i32
    return %c0_i32, %c0_i32_0 : i32, i32
  }
  func.func @transform_4(%arg0: i32, %arg1: i32) -> (i32, i32) {
    %c0_i32 = arith.constant 0 : i32
    %c0_i32_0 = arith.constant 0 : i32
    return %arg0, %c0_i32 : i32, i32
  }
}

</mosaic_0001>

<bundles_post_ra>
// kernel: tpu_custom_call.1
= control target key start
LH: loop header
LB: loop body
LE: loop exit
PB: predicated region body
PF: predicated region fallthrough
CT: control target
= control target key end

     0   :  { %9 = vsyncpa [#allocation4], 0  ;;  %s892_s0 = inlined_call_operand.hbm [shape: bf16[128,128], index: 0, kind: input, shape index: {}]   ;;  %s893_s1 = inlined_call_operand.hbm [shape: bf16[128,128], index: 1, kind: input, shape index: {}]   ;;  %s894_s2 = inlined_call_operand.hbm [shape: bf16[128,128], index: 2, kind: input, shape index: {}]   ;;  %s895_s3 = inlined_call_operand.vmem [shape: f32[1,128], index: 3, kind: input, shape index: {}]   ;;  %s896_s4 = inlined_call_operand.hbm [shape: bf16[128,128], index: 4, kind: output, shape index: {}]  }
   0x1   :  { %10 = vsyncpa [#allocation7], 0 }
   0x2   :  { %11 = vsyncpa [#allocation5], 0  ;;  %s29_s17 = sshll.u32 %s893_s1, 4  ;;  %s834_s18 = smov [#allocation6]   ;;  %s30_s17 = int_to_ptr.hbm [resolvable:$true] %s29_s17 }
   0x3   :  { %s31_s19 = sshll.u32 %s834_s18, 4  ;;  %s16_s22 = sshll.u32 %s892_s0, 4  ;;  %s32_s19 = int_to_ptr.vmem [resolvable:$true] %s31_s19  ;;  %s17_s22 = int_to_ptr.hbm [resolvable:$true] %s16_s22 }
   0x4   :  { %s835_s23 = smov 64   ;;  %s836_s24 = smov 4  }
   0x5   :  { %37 = dma.hbm_to_vmem [thread:$0]  %s30_s17, 1024, %s32_s19, [#allocation7], %s835_s23, %s835_s23, %s836_s24  }
   0x6   :  { %s837_s25 = smov [#allocation3]   ;;  %s42_s1 = sshll.u32 %s894_s2, 4  ;;  %s43_s1 = int_to_ptr.hbm [resolvable:$true] %s42_s1 }
   0x7   :  { %s18_s26 = sshll.u32 %s837_s25, 4  ;;  %s838_s0 = smov [#allocation8]   ;;  %s19_s26 = int_to_ptr.vmem [resolvable:$true] %s18_s26 }
   0x8   :  { %24 = dma.hbm_to_vmem [thread:$0]  %s17_s22, 1024, %s19_s26, [#allocation4], %s835_s23, %s835_s23, %s836_s24  }
   0x9   :  { %s44_s29 = sshll.u32 %s838_s0, 4  ;;  %s45_s29 = int_to_ptr.vmem [resolvable:$true] %s44_s29 }
   0xa   :  { %50 = dma.hbm_to_vmem [thread:$0]  %s43_s1, 1024, %s45_s29, [#allocation7], %s835_s23, %s835_s23, %s836_s24  }
   0xb   :  { %828 = dma.done.wait [#allocation4], 1024  }
   0xc   :  { %829 = vsyncadd [#allocation4], 4294966272 }
   0xd   :  { %830 = dma.done.wait [#allocation7], 2048  }
   0xe   :  { %831 = vsyncadd [#allocation7], 4294965248  ;;  %v653_v0 = vld [vmem:[#allocation8 + $0x38] sm:$0xff]  ;;  %v652_v1 = vld [vmem:[#allocation8 + $0x30] sm:$0xff]  ;;  %s528_s8 = sshll.u32 %s896_s4, 4  ;;  %s529_s8 = int_to_ptr.hbm [resolvable:$true] %s528_s8 }
   0xf   :  { %709 = vmatpush.bf16.msra.mxu2 %v653_v0  ;;  %193 = vmatpush.bf16.msra.mxu0 %v653_v0  ;;  %v651_v2 = vld [vmem:[#allocation8 + $0x28] sm:$0xff]  ;;  %v650_v3 = vld [vmem:[#allocation8 + $0x20] sm:$0xff]  ;;  %v649_v4 = vld [vmem:[#allocation8 + $0x18] sm:$0xff] }
  0x10   :  { %v648_v5 = vld [vmem:[#allocation8 + $0x10] sm:$0xff]  ;;  %v647_v6 = vld [vmem:[#allocation8 + $0x8] sm:$0xff]  ;;  %v646_v7 = vld [vmem:[#allocation8] sm:$0xff] }
  0x11   :  { %v642_v8 = vld [vmem:[#allocation6 + $0x20] sm:$0xff]  ;;  %v643_v10 = vld [vmem:[#allocation6 + $0x28] sm:$0xff]  ;;  %v644_v12 = vld [vmem:[#allocation6 + $0x30] sm:$0xff] }
  0x12   :  { %v638_v9 = vld [vmem:[#allocation6] sm:$0xff]  ;;  %v639_v11 = vld [vmem:[#allocation6 + $0x8] sm:$0xff]  ;;  %v640_v13 = vld [vmem:[#allocation6 + $0x10] sm:$0xff] }
  0x13   :  { %710 = vmatpush.bf16.msra.mxu2 %v652_v1  ;;  %194 = vmatpush.bf16.msra.mxu0 %v652_v1  ;;  %v645_v14 = vld [vmem:[#allocation6 + $0x38] sm:$0xff]  ;;  %v654_v40 = vld [vmem:[#allocation3] sm:$0xff]  ;;  %v655_v42 = vld [vmem:[#allocation3 + $0x8] sm:$0xff] }
  0x14   :  { %v641_v15 = vld [vmem:[#allocation6 + $0x18] sm:$0xff]  ;;  %v658_v41 = vld [vmem:[#allocation3 + $0x20] sm:$0xff]  ;;  %v659_v43 = vld [vmem:[#allocation3 + $0x28] sm:$0xff] }
  0x15   :  { %v656_v44 = vld [vmem:[#allocation3 + $0x10] sm:$0xff]  ;;  %v657_v46 = vld [vmem:[#allocation3 + $0x18] sm:$0xff]  ;;  %v731_v49 = vld [vmem:[%s895_s3] ss:$0 sm:$0xff]  ;;  %s839_s3 = smov [#allocation9]  }
  0x16   :  { %v660_v45 = vld [vmem:[#allocation3 + $0x30] sm:$0xff]  ;;  %v661_v47 = vld [vmem:[#allocation3 + $0x38] sm:$0xff]  ;;  %s526_s5 = sshll.u32 %s839_s3, 4  ;;  %s527_s5 = int_to_ptr.vmem [resolvable:$true] %s526_s5 }
  0x17   :  { %711 = vmatpush.bf16.msra.mxu2 %v651_v2  ;;  %195 = vmatpush.bf16.msra.mxu0 %v651_v2 }
  0x1b   :  { %712 = vmatpush.bf16.msra.mxu2 %v650_v3  ;;  %196 = vmatpush.bf16.msra.mxu0 %v650_v3 }
  0x1f   :  { %713 = vmatpush.bf16.msra.mxu2 %v649_v4  ;;  %197 = vmatpush.bf16.msra.mxu0 %v649_v4 }
  0x23   :  { %714 = vmatpush.bf16.msra.mxu2 %v648_v5  ;;  %198 = vmatpush.bf16.msra.mxu0 %v648_v5 }
  0x27   :  { %715 = vmatpush.bf16.msra.mxu2 %v647_v6  ;;  %199 = vmatpush.bf16.msra.mxu0 %v647_v6 }
  0x2b   :  { %716 = vmatpush.bf16.msra.mxu2 %v646_v7  ;;  %200 = vmatpush.bf16.msra.mxu0 %v646_v7 }
  0x2e   :  { %221 = vmatmul.bf16.vlgmr.msra.gmra.mxu2 %v642_v8  ;;  %201 = vmatmul.bf16.vlgmr.msra.gmra.mxu0 %v638_v9 }
  0x3e   :  { %226 = vmatmul.bf16.gmra.mxu2 %v643_v10  ;;  %206 = vmatmul.bf16.gmra.mxu0 %v639_v11 }
  0x4e   :  { %231 = vmatmul.bf16.gmra.mxu2 %v644_v12  ;;  %211 = vmatmul.bf16.gmra.mxu0 %v640_v13 }
  0x5e   :  { %236 = vmatmul.bf16.gmra.mxu2 %v645_v14  ;;  %216 = vmatmul.bf16.gmra.mxu0 %v641_v15 }
  0xab   :  { %v202_v17 = vpop.f32.mrf.mxu0 }
  0xb1   :  { %v222_v16 = vpop.f32.mrf.mxu2 }
  0xb3   :  { %v204_v19 = vpop.f32.mrf.mxu0 }
  0xb4   :  { %v242_v39 = vpack.c.bf16 %v204_v19, %v202_v17 }
  0xb9   :  { %v224_v18 = vpop.f32.mrf.mxu2 }
  0xba   :  { %v246_v34 = vpack.c.bf16 %v224_v18, %v222_v16 }
  0xbb   :  { %v207_v21 = vpop.f32.mrf.mxu0 }
  0xc1   :  { %v227_v20 = vpop.f32.mrf.mxu2 }
  0xc3   :  { %v209_v23 = vpop.f32.mrf.mxu0 }
  0xc4   :  { %v243_v38 = vpack.c.bf16 %v209_v23, %v207_v21 }
  0xc9   :  { %v229_v22 = vpop.f32.mrf.mxu2 }
  0xca   :  { %v247_v33 = vpack.c.bf16 %v229_v22, %v227_v20 }
  0xcb   :  { %v212_v25 = vpop.f32.mrf.mxu0 }
  0xd1   :  { %v232_v24 = vpop.f32.mrf.mxu2 }
  0xd3   :  { %v214_v28 = vpop.f32.mrf.mxu0 }
  0xd4   :  { %v244_v37 = vpack.c.bf16 %v214_v28, %v212_v25 }
  0xd9   :  { %v234_v26 = vpop.f32.mrf.mxu2 }
  0xda   :  { %v248_v32 = vpack.c.bf16 %v234_v26, %v232_v24 }
  0xdb   :  { %v217_v31 = vpop.f32.mrf.mxu0 }
  0xe1   :  { %v237_v27 = vpop.f32.mrf.mxu2 }
  0xe3   :  { %v219_v35 = vpop.f32.mrf.mxu0 }
  0xe4   :  { %v245_v36 = vpack.c.bf16 %v219_v35, %v217_v31 }
  0xe9   :  { %v239_v29 = vpop.f32.mrf.mxu2 }
  0xea   :  { %v249_v30 = vpack.c.bf16 %v239_v29, %v237_v27 }
  0xec   :  { %314 = vmatpush.bf16.msra.mxu1 %v249_v30  ;;  %717 = vmatpush.bf16.msra.mxu3 %v249_v30 }
  0xf0   :  { %315 = vmatpush.bf16.msra.mxu1 %v248_v32  ;;  %718 = vmatpush.bf16.msra.mxu3 %v248_v32 }
  0xf4   :  { %316 = vmatpush.bf16.msra.mxu1 %v247_v33  ;;  %719 = vmatpush.bf16.msra.mxu3 %v247_v33 }
  0xf8   :  { %317 = vmatpush.bf16.msra.mxu1 %v246_v34  ;;  %720 = vmatpush.bf16.msra.mxu3 %v246_v34 }
  0xfc   :  { %318 = vmatpush.bf16.msra.mxu1 %v245_v36  ;;  %721 = vmatpush.bf16.msra.mxu3 %v245_v36 }
 0x100   :  { %319 = vmatpush.bf16.msra.mxu1 %v244_v37  ;;  %722 = vmatpush.bf16.msra.mxu3 %v244_v37 }
 0x104   :  { %320 = vmatpush.bf16.msra.mxu1 %v243_v38  ;;  %723 = vmatpush.bf16.msra.mxu3 %v243_v38 }
 0x108   :  { %321 = vmatpush.bf16.msra.mxu1 %v242_v39  ;;  %724 = vmatpush.bf16.msra.mxu3 %v242_v39 }
 0x10b   :  { %322 = vmatmul.bf16.vlgmr.msra.gmra.mxu1 %v654_v40  ;;  %342 = vmatmul.bf16.vlgmr.msra.gmra.mxu3 %v658_v41 }
 0x11b   :  { %327 = vmatmul.bf16.gmra.mxu1 %v655_v42  ;;  %347 = vmatmul.bf16.gmra.mxu3 %v659_v43 }
 0x12b   :  { %332 = vmatmul.bf16.gmra.mxu1 %v656_v44  ;;  %352 = vmatmul.bf16.gmra.mxu3 %v660_v45 }
 0x13b   :  { %337 = vmatmul.bf16.gmra.mxu1 %v657_v46  ;;  %357 = vmatmul.bf16.gmra.mxu3 %v661_v47 }
 0x188   :  { %v323_v48 = vpop.f32.mrf.mxu1 }
 0x189   :  { %v458_v51 = vadd.f32 %v731_v49, %v323_v48 }
 0x18b   :  { %v474_v54 = vmax.f32 %v458_v51, 0.0 }
 0x18e   :  { %v343_v50 = vpop.f32.mrf.mxu3 }
 0x18f   :  { %v466_v56 = vadd.f32 %v731_v49, %v343_v50 }
 0x190   :  { %v325_v52 = vpop.f32.mrf.mxu1 }
 0x191   :  { %v459_v53 = vadd.f32 %v731_v49, %v325_v52  ;;  %v482_v61 = vmax.f32 %v466_v56, 0.0 }
 0x193   :  { %v475_v55 = vmax.f32 %v459_v53, 0.0 }
 0x195   :  { %v665_v57 = vpack.c.bf16 %v475_v55, %v474_v54 }
 0x196   :  { %v345_v58 = vpop.f32.mrf.mxu3 }
 0x197   :  { %666 = vst [vmem:[#allocation9] sm:$0xff] %v665_v57   ;;  %v467_v59 = vadd.f32 %v731_v49, %v345_v58 }
 0x198   :  { %v328_v60 = vpop.f32.mrf.mxu1 }
 0x199   :  { %v483_v62 = vmax.f32 %v467_v59, 0.0  ;;  %v460_v1 = vadd.f32 %v731_v49, %v328_v60 }
 0x19b   :  { %v685_v63 = vpack.c.bf16 %v483_v62, %v482_v61  ;;  %v476_v4 = vmax.f32 %v460_v1, 0.0 }
 0x19d   :  { %705 = vst [vmem:[#allocation9 + $0x20] sm:$0xff] %v685_v63  }
 0x19e   :  { %v348_v0 = vpop.f32.mrf.mxu3 }
 0x19f   :  { %v468_v6 = vadd.f32 %v731_v49, %v348_v0 }
 0x1a0   :  { %v330_v2 = vpop.f32.mrf.mxu1 }
 0x1a1   :  { %v461_v3 = vadd.f32 %v731_v49, %v330_v2  ;;  %v484_v11 = vmax.f32 %v468_v6, 0.0 }
 0x1a3   :  { %v477_v5 = vmax.f32 %v461_v3, 0.0 }
 0x1a5   :  { %v670_v7 = vpack.c.bf16 %v477_v5, %v476_v4 }
 0x1a6   :  { %v350_v8 = vpop.f32.mrf.mxu3 }
 0x1a7   :  { %702 = vst [vmem:[#allocation9 + $0x8] sm:$0xff] %v670_v7   ;;  %v469_v9 = vadd.f32 %v731_v49, %v350_v8 }
 0x1a8   :  { %v333_v10 = vpop.f32.mrf.mxu1 }
 0x1a9   :  { %v485_v12 = vmax.f32 %v469_v9, 0.0  ;;  %v462_v15 = vadd.f32 %v731_v49, %v333_v10 }
 0x1ab   :  { %v690_v13 = vpack.c.bf16 %v485_v12, %v484_v11  ;;  %v478_v18 = vmax.f32 %v462_v15, 0.0 }
 0x1ad   :  { %706 = vst [vmem:[#allocation9 + $0x28] sm:$0xff] %v690_v13  }
 0x1ae   :  { %v353_v14 = vpop.f32.mrf.mxu3 }
 0x1af   :  { %v470_v20 = vadd.f32 %v731_v49, %v353_v14 }
 0x1b0   :  { %v335_v16 = vpop.f32.mrf.mxu1 }
 0x1b1   :  { %v463_v17 = vadd.f32 %v731_v49, %v335_v16  ;;  %v486_v25 = vmax.f32 %v470_v20, 0.0 }
 0x1b3   :  { %v479_v19 = vmax.f32 %v463_v17, 0.0 }
 0x1b5   :  { %v675_v21 = vpack.c.bf16 %v479_v19, %v478_v18 }
 0x1b6   :  { %v355_v22 = vpop.f32.mrf.mxu3 }
 0x1b7   :  { %703 = vst [vmem:[#allocation9 + $0x10] sm:$0xff] %v675_v21   ;;  %v471_v23 = vadd.f32 %v731_v49, %v355_v22 }
 0x1b8   :  { %v338_v24 = vpop.f32.mrf.mxu1 }
 0x1b9   :  { %v487_v26 = vmax.f32 %v471_v23, 0.0  ;;  %v464_v29 = vadd.f32 %v731_v49, %v338_v24 }
 0x1bb   :  { %v695_v27 = vpack.c.bf16 %v487_v26, %v486_v25  ;;  %v480_v32 = vmax.f32 %v464_v29, 0.0 }
 0x1bd   :  { %707 = vst [vmem:[#allocation9 + $0x30] sm:$0xff] %v695_v27  }
 0x1be   :  { %v358_v28 = vpop.f32.mrf.mxu3 }
 0x1bf   :  { %v472_v34 = vadd.f32 %v731_v49, %v358_v28 }
 0x1c0   :  { %v340_v30 = vpop.f32.mrf.mxu1 }
 0x1c1   :  { %v465_v31 = vadd.f32 %v731_v49, %v340_v30  ;;  %v488_v38 = vmax.f32 %v472_v34, 0.0 }
 0x1c3   :  { %v481_v33 = vmax.f32 %v465_v31, 0.0 }
 0x1c5   :  { %v680_v35 = vpack.c.bf16 %v481_v33, %v480_v32 }
 0x1c6   :  { %v360_v36 = vpop.f32.mrf.mxu3 }
 0x1c7   :  { %704 = vst [vmem:[#allocation9 + $0x18] sm:$0xff] %v680_v35   ;;  %v473_v37 = vadd.f32 %v731_v49, %v360_v36 }
 0x1c9   :  { %v489_v39 = vmax.f32 %v473_v37, 0.0 }
 0x1cb   :  { %v700_v40 = vpack.c.bf16 %v489_v39, %v488_v38 }
 0x1cd   :  { %708 = vst [vmem:[#allocation9 + $0x38] sm:$0xff] %v700_v40  }
 0x1ce   :  { %534 = dma.vmem_to_hbm [thread:$0]  %s527_s5, 1024, %s529_s8, [#allocation5], %s835_s23, %s835_s23, %s836_s24  }
 0x1cf   :  { %832 = dma.done.wait [#allocation5], 1024  }
 0x1d0   :  { %833 = vsyncadd [#allocation5], 4294966272 }
 0x1d1   :  { %539 = vsyncpa [#allocation4], 1 }
 0x1d2   :  { %540 = vsyncpa [#allocation7], 1 }
 0x1d3   :  { %541 = vsyncpa [#allocation5], 1 }

</bundles_post_ra>
